<compile_context>
chip_gen: v7x
topology: tpu7x:2x2x1
jax: 0.10.0
libtpu: 0.0.40
codegen_flags: <defaults>
</compile_context>

<pallas_src>
import functools

import jax
import jax.numpy as jnp
from jax.experimental import pallas as pl
from jax.experimental.pallas import tpu as pltpu


def glmzip_kernel(n_voxels, inner_steps, tile_n, needs_pad,
                  c_ref, logmux_ref, logmuz_ref, muz_ref, mask_ref,
                  out_ref, acc_ref):
    """One grid step processes a (1, tile_n) slab of voxels for all studies.

    c_ref      : SMEM (2,)            [psi, log(1-psi)]
    logmux_ref : VMEM (1, tile_n)     precomputed log_mu_X tile (lane-dense)
    logmuz_ref : VMEM (S, 1)          precomputed log_mu_Z (grid-invariant)
    muz_ref    : VMEM (S, 1)          precomputed exp(log_mu_Z)
    mask_ref   : VMEM (S, tile_n) i8  1 where (study, voxel) is a non-zero voxel
    out_ref    : VMEM (1, S, 128)     per-outer-block partial sums (col 0 used)
    acc_ref    : VMEM (S, 1)          per-study running partial for this outer block
    """
    o = pl.program_id(0)          # parallel axis (voxel-range split)
    i = pl.program_id(1)          # arbitrary axis (tiles inside this split)

    @pl.when(i == 0)
    def _init():
        acc_ref[...] = jnp.zeros_like(acc_ref)

    psi = c_ref[0]
    log1m_psi = c_ref[1]

    log_mu_x = logmux_ref[...]                     # (1, TN)
    mu_x = jnp.exp(log_mu_x)                       # (1, TN)  one EUP op per voxel
    log_mu_z = logmuz_ref[...]                     # (S, 1)
    mu_z = muz_ref[...]                            # (S, 1)

    mu = mu_z * mu_x                               # (S, TN)
    log_mu = log_mu_z + log_mu_x                   # (S, TN)

    nonzero_term = log1m_psi - mu + log_mu
    zero_term = jnp.log(psi + (1.0 - psi) * jnp.exp(-mu))
    term = jnp.where(mask_ref[...] != 0, nonzero_term, zero_term)

    if needs_pad:
        # Zero out padded voxel lanes exactly (padded lanes are NOT benign:
        # they would otherwise contribute a spurious zero_term).
        base = (o * inner_steps + i) * tile_n
        lane = jax.lax.broadcasted_iota(jnp.int32, (1, tile_n), 1)
        valid = (base + lane) < n_voxels           # (1, TN)
        term = jnp.where(valid, term, 0.0)

    # Per-study lane reduction (XLU); tiny vector-domain carry, no big RMW.
    acc_ref[...] += jnp.sum(term, axis=1, keepdims=True)    # (S, 1)

    @pl.when(i == inner_steps - 1)
    def _finalize():
        out_ref[...] = jnp.broadcast_to(acc_ref[...], out_ref.shape)


@functools.partial(jax.jit, static_argnames=("tile_n",))
def glmzip_forward(X, Z, beta_w, gamma_w, psi, mask, *, tile_n=2048):
    """Returns the scalar negative log-likelihood.

    X      : (N, P)  voxel design matrix
    Z      : (S, G)  study covariates
    beta_w : (1, P)  beta_linear.weight
    gamma_w: (1, G)  gamma_linear.weight
    psi    : ()      zero-inflation probability
    mask   : (S, N)  nonzero at (study, voxel) pairs listed in y_p
    """
    N, P = X.shape
    S, G = Z.shape
    f32 = jnp.float32

    X = X.astype(f32)
    Z = Z.astype(f32)
    beta_w = beta_w.astype(f32)
    gamma_w = gamma_w.astype(f32)
    psi = jnp.asarray(psi, f32)

    # Hoisted, grid-invariant GEMVs done once by XLA in native layouts.
    log_mu_x = (X @ beta_w.T).reshape(1, N)        # (1, N)
    log_mu_z = Z @ gamma_w.T                       # (S, 1)
    mu_z = jnp.exp(log_mu_z)                       # (S, 1)

    # Voxel tiling: outer "parallel" split (v7x megacore) x inner "arbitrary".
    tiles = -(-N // tile_n)                        # cdiv
    num_outer = 2 if tiles >= 2 else 1
    tiles = -(-tiles // num_outer) * num_outer
    inner = tiles // num_outer
    n_pad = tiles * tile_n
    needs_pad = n_pad != N

    if needs_pad:
        log_mu_x = jnp.pad(log_mu_x, ((0, 0), (0, n_pad - N)))
        mask = jnp.pad(mask, ((0, 0), (0, n_pad - N)))
    mask = mask.astype(jnp.int8)                   # quarter the mask HBM stream

    c = jnp.stack([psi, jnp.log1p(-psi)]).astype(f32)   # [psi, log(1-psi)]

    kernel = functools.partial(glmzip_kernel, N, inner, tile_n, needs_pad)

    out = pl.pallas_call(
        kernel,
        out_shape=jax.ShapeDtypeStruct((num_outer, S, 128), f32),
        grid=(num_outer, inner),
        in_specs=[
            pl.BlockSpec(memory_space=pltpu.MemorySpace.SMEM),           # [psi, log1m]
            pl.BlockSpec((1, tile_n), lambda o, i: (0, o * inner + i)),  # log_mu_X tile
            pl.BlockSpec((S, 1), lambda o, i: (0, 0)),                   # log_mu_Z
            pl.BlockSpec((S, 1), lambda o, i: (0, 0)),                   # mu_Z
            pl.BlockSpec((S, tile_n), lambda o, i: (0, o * inner + i)),  # mask tile
        ],
        out_specs=pl.BlockSpec((1, S, 128), lambda o, i: (o, 0, 0)),
        scratch_shapes=[pltpu.VMEM((S, 1), f32)],
        compiler_params=pltpu.CompilerParams(
            dimension_semantics=("parallel", "arbitrary")),
    )(c, log_mu_x, log_mu_z, mu_z, mask)

    # Column 0 of each (outer, study) block holds that block's partial sum.
    return -jnp.sum(out[:, :, 0])


def glmzip_reference(X, Z, beta_w, gamma_w, psi, mask):
    """Plain-JAX reference matching the PyTorch forward semantics."""
    log_mu_X = X @ beta_w.T                 # (N, 1)
    mu_X = jnp.exp(log_mu_X)
    log_mu_Z = Z @ gamma_w.T                # (S, 1)
    mu_Z = jnp.exp(log_mu_Z)
    mu = mu_Z * mu_X.T                      # (S, N)
    log_mu = log_mu_Z + log_mu_X.T
    nonzero_term = jnp.log(1.0 - psi) - mu + log_mu
    zero_term = jnp.log(psi + (1.0 - psi) * jnp.exp(-mu))
    term = jnp.where(mask != 0, nonzero_term, zero_term)
    return -jnp.sum(term)


if __name__ == "__main__":
    key = jax.random.PRNGKey(0)
    k_x, k_z, k_b, k_g, k_p = jax.random.split(key, 5)

    # Small synthetic problem sizes (N not a multiple of tile_n on purpose).
    N = 6000          # number of voxels
    P = 32            # beta_dim (spline basis dim)
    G = 16            # gamma_dim (study covariate dim)
    S = 8             # n_study ( = y_t.shape[0] )
    nz_per_study = 50 # non-zero voxels per study

    X = jax.random.uniform(k_x, (N, P), jnp.float32, 0.0, 1.0)
    Z = jax.random.uniform(k_z, (S, G), jnp.float32, 0.0, 1.0)

    # Linear weights ~ U(-0.01, 0.01), matching torch.nn.init.uniform_.
    beta_w = jax.random.uniform(k_b, (1, P), jnp.float32, -0.01, 0.01)
    gamma_w = jax.random.uniform(k_g, (1, G), jnp.float32, -0.01, 0.01)
    psi = jnp.float32(0.01)

    # y_p : (num_foci, 2) rows of (study_id, voxel_id), unique pairs.
    perms = jax.vmap(lambda k: jax.random.permutation(k, N)[:nz_per_study])(
        jax.random.split(k_p, S))                       # (S, nz_per_study)
    study_ids = jnp.repeat(jnp.arange(S, dtype=jnp.int32), nz_per_study)
    voxel_ids = perms.reshape(-1).astype(jnp.int32)
    y_p = jnp.stack([study_ids, voxel_ids], axis=1)     # (S*nz, 2)

    # y / y_t only influence shapes in the PyTorch forward (y unused, y_t -> S).
    y_t = jnp.zeros((S,), jnp.float32)
    y = jnp.zeros((N,), jnp.float32)

    # Dense non-zero-voxel mask built from y_p (glue; replaces gather/setdiff).
    mask = jnp.zeros((S, N), jnp.int8).at[y_p[:, 0], y_p[:, 1]].set(1)

    loss = glmzip_forward(X, Z, beta_w, gamma_w, psi, mask)
    loss = jax.block_until_ready(loss)

    ref = glmzip_reference(X, Z, beta_w, gamma_w, psi, mask)
    assert jnp.allclose(loss, ref, rtol=1e-3, atol=1e-1), (loss, ref)

    print("KERNEL_OK")
</pallas_src>

<mosaic_0001>
module attributes {stable_mosaic.version = 11 : i64} {
  func.func @glmzip_kernel(%arg0: i32, %arg1: i32, %arg2: memref<2xf32, #tpu.memory_space<smem>>, %arg3: memref<1x2048xf32, #tpu.memory_space<vmem>>, %arg4: memref<8x1xf32, #tpu.memory_space<vmem>>, %arg5: memref<8x1xf32, #tpu.memory_space<vmem>>, %arg6: memref<8x2048xi8, #tpu.memory_space<vmem>>, %arg7: memref<1x8x128xf32, #tpu.memory_space<vmem>>, %arg8: memref<8x1xf32, #tpu.memory_space<vmem>>) attributes {dimension_semantics = [#tpu.dimension_semantics<parallel>, #tpu.dimension_semantics<arbitrary>], iteration_bounds = array<i64: 2, 2>, scalar_prefetch = 0 : i64, scratch_operands = 1 : i64, tpu.core_type = #tpu.core_type<tc>, window_params = [{transform_indices = @transform_0, window_bounds = array<i64: 2>}, {transform_indices = @transform_1, window_bounds = array<i64: 1, 2048>}, {pipeline_mode = #tpu.pipeline_mode<synchronous>, transform_indices = @transform_2, window_bounds = array<i64: 8, 1>}, {pipeline_mode = #tpu.pipeline_mode<synchronous>, transform_indices = @transform_3, window_bounds = array<i64: 8, 1>}, {transform_indices = @transform_4, window_bounds = array<i64: 8, 2048>}, {transform_indices = @transform_5, window_bounds = array<i64: 1, 8, 128>}]} {
    %c0_i32 = arith.constant 0 : i32
    %0 = arith.cmpi eq, %arg1, %c0_i32 : i32
    %1 = arith.extui %0 : i1 to i32
    %c0_i32_0 = arith.constant 0 : i32
    %2 = arith.cmpi ne, %1, %c0_i32_0 : i32
    scf.if %2 {
      %cst_17 = arith.constant 0.000000e+00 : f32
      %51 = vector.broadcast %cst_17 : f32 to vector<8x1xf32>
      %c0_18 = arith.constant 0 : index
      %c0_19 = arith.constant 0 : index
      %52 = vector.load %arg8[%c0_18, %c0_19] : memref<8x1xf32, #tpu.memory_space<vmem>>, vector<8x1xf32>
      tpu.vector_store %arg8[%c0_18, %c0_19], %51 {strides = array<i32>} : memref<8x1xf32, #tpu.memory_space<vmem>>, vector<8x1xf32>,
    } else {
    }
    %c0 = arith.constant 0 : index
    %3 = memref.load %arg2[%c0] : memref<2xf32, #tpu.memory_space<smem>>
    %c1 = arith.constant 1 : index
    %4 = memref.load %arg2[%c1] : memref<2xf32, #tpu.memory_space<smem>>
    %c0_1 = arith.constant 0 : index
    %c0_2 = arith.constant 0 : index
    %5 = vector.load %arg3[%c0_1, %c0_2] : memref<1x2048xf32, #tpu.memory_space<vmem>>, vector<1x2048xf32>
    %6 = math.exp %5 : vector<1x2048xf32>
    %c0_3 = arith.constant 0 : index
    %c0_4 = arith.constant 0 : index
    %7 = vector.load %arg4[%c0_3, %c0_4] : memref<8x1xf32, #tpu.memory_space<vmem>>, vector<8x1xf32>
    %c0_5 = arith.constant 0 : index
    %c0_6 = arith.constant 0 : index
    %8 = vector.load %arg5[%c0_5, %c0_6] : memref<8x1xf32, #tpu.memory_space<vmem>>, vector<8x1xf32>
    %9 = vector.broadcast %8 : vector<8x1xf32> to vector<8x2048xf32>
    %10 = vector.broadcast %6 : vector<1x2048xf32> to vector<8x2048xf32>
    %11 = arith.mulf %9, %10 : vector<8x2048xf32>
    %12 = vector.broadcast %7 : vector<8x1xf32> to vector<8x2048xf32>
    %13 = vector.broadcast %5 : vector<1x2048xf32> to vector<8x2048xf32>
    %14 = arith.addf %12, %13 : vector<8x2048xf32>
    %15 = vector.broadcast %4 : f32 to vector<8x2048xf32>
    %16 = arith.subf %15, %11 : vector<8x2048xf32>
    %17 = arith.addf %16, %14 : vector<8x2048xf32>
    %cst = arith.constant 1.000000e+00 : f32
    %18 = arith.subf %cst, %3 : f32
    %cst_7 = arith.constant 0.000000e+00 : f32
    %19 = vector.broadcast %cst_7 : f32 to vector<8x2048xf32>
    %20 = arith.subf %19, %11 : vector<8x2048xf32>
    %21 = math.exp %20 : vector<8x2048xf32>
    %22 = vector.broadcast %18 : f32 to vector<8x2048xf32>
    %23 = arith.mulf %22, %21 : vector<8x2048xf32>
    %24 = vector.broadcast %3 : f32 to vector<8x2048xf32>
    %25 = arith.addf %24, %23 : vector<8x2048xf32>
    %26 = math.log %25 : vector<8x2048xf32>
    %c0_8 = arith.constant 0 : index
    %c0_9 = arith.constant 0 : index
    %27 = vector.load %arg6[%c0_8, %c0_9] : memref<8x2048xi8, #tpu.memory_space<vmem>>, vector<8x2048xi8>
    %c0_i8 = arith.constant 0 : i8
    %28 = vector.broadcast %c0_i8 : i8 to vector<8x2048xi8>
    %29 = arith.cmpi ne, %27, %28 : vector<8x2048xi8>
    %30 = arith.select %29, %17, %26 : vector<8x2048xi1>, vector<8x2048xf32>
    %c2_i32 = arith.constant 2 : i32
    %31 = arith.muli %arg0, %c2_i32 : i32
    %32 = arith.addi %31, %arg1 : i32
    %c2048_i32 = arith.constant 2048 : i32
    %33 = arith.muli %32, %c2048_i32 : i32
    %34 = tpu.iota {dimensions = array<i32: 1>} : vector<1x2048xi32>
    %35 = vector.broadcast %33 : i32 to vector<1x2048xi32>
    %36 = arith.addi %35, %34 : vector<1x2048xi32>
    %c6000_i32 = arith.constant 6000 : i32
    %37 = vector.broadcast %c6000_i32 : i32 to vector<1x2048xi32>
    %38 = arith.cmpi slt, %36, %37 : vector<1x2048xi32>
    %cst_10 = arith.constant 0.000000e+00 : f32
    %39 = vector.shape_cast %38 : vector<1x2048xi1> to vector<1x2048xi1>
    %40 = vector.broadcast %39 : vector<1x2048xi1> to vector<8x2048xi1>
    %41 = vector.broadcast %cst_10 : f32 to vector<8x2048xf32>
    %42 = arith.select %40, %30, %41 : vector<8x2048xi1>, vector<8x2048xf32>
    %c0_11 = arith.constant 0 : index
    %c0_12 = arith.constant 0 : index
    %43 = vector.load %arg8[%c0_11, %c0_12] : memref<8x1xf32, #tpu.memory_space<vmem>>, vector<8x1xf32>
    %cst_13 = arith.constant dense<0.000000e+00> : vector<8xf32>
    %44 = vector.multi_reduction <add>, %42, %cst_13 [1] : vector<8x2048xf32> to vector<8xf32>
    %45 = vector.shape_cast %44 : vector<8xf32> to vector<8x1xf32>
    %46 = arith.addf %43, %45 : vector<8x1xf32>
    %c0_14 = arith.constant 0 : index
    %c0_15 = arith.constant 0 : index
    %47 = vector.load %arg8[%c0_14, %c0_15] : memref<8x1xf32, #tpu.memory_space<vmem>>, vector<8x1xf32>
    tpu.vector_store %arg8[%c0_14, %c0_15], %46 {strides = array<i32>} : memref<8x1xf32, #tpu.memory_space<vmem>>, vector<8x1xf32>,
    %c1_i32 = arith.constant 1 : i32
    %48 = arith.cmpi eq, %arg1, %c1_i32 : i32
    %49 = arith.extui %48 : i1 to i32
    %c0_i32_16 = arith.constant 0 : i32
    %50 = arith.cmpi ne, %49, %c0_i32_16 : i32
    scf.if %50 {
      %c0_17 = arith.constant 0 : index
      %c0_18 = arith.constant 0 : index
      %51 = vector.load %arg8[%c0_17, %c0_18] : memref<8x1xf32, #tpu.memory_space<vmem>>, vector<8x1xf32>
      %52 = vector.shape_cast %51 : vector<8x1xf32> to vector<1x8x1xf32>
      %53 = vector.broadcast %52 : vector<1x8x1xf32> to vector<1x8x128xf32>
      %c0_19 = arith.constant 0 : index
      %c0_20 = arith.constant 0 : index
      %c0_21 = arith.constant 0 : index
      %54 = vector.load %arg7[%c0_19, %c0_20, %c0_21] : memref<1x8x128xf32, #tpu.memory_space<vmem>>, vector<1x8x128xf32>
      tpu.vector_store %arg7[%c0_19, %c0_20, %c0_21], %53 {strides = array<i32>} : memref<1x8x128xf32, #tpu.memory_space<vmem>>, vector<1x8x128xf32>,
    } else {
    }
    return
  }
  func.func @transform_0(%arg0: i32, %arg1: i32) -> i32 {
    %c0_i32 = arith.constant 0 : i32
    %c0_i32_0 = arith.constant 0 : i32
    return %c0_i32 : i32
  }
  func.func @transform_1(%arg0: i32, %arg1: i32) -> (i32, i32) {
    %c2_i32 = arith.constant 2 : i32
    %0 = arith.muli %arg0, %c2_i32 : i32
    %1 = arith.addi %0, %arg1 : i32
    %c0_i32 = arith.constant 0 : i32
    %c0_i32_0 = arith.constant 0 : i32
    return %c0_i32, %1 : i32, i32
  }
  func.func @transform_2(%arg0: i32, %arg1: i32) -> (i32, i32) {
    %c0_i32 = arith.constant 0 : i32
    %c0_i32_0 = arith.constant 0 : i32
    %c0_i32_1 = arith.constant 0 : i32
    return %c0_i32, %c0_i32_0 : i32, i32
  }
  func.func @transform_3(%arg0: i32, %arg1: i32) -> (i32, i32) {
    %c0_i32 = arith.constant 0 : i32
    %c0_i32_0 = arith.constant 0 : i32
    %c0_i32_1 = arith.constant 0 : i32
    return %c0_i32, %c0_i32_0 : i32, i32
  }
  func.func @transform_4(%arg0: i32, %arg1: i32) -> (i32, i32) {
    %c2_i32 = arith.constant 2 : i32
    %0 = arith.muli %arg0, %c2_i32 : i32
    %1 = arith.addi %0, %arg1 : i32
    %c0_i32 = arith.constant 0 : i32
    %c0_i32_0 = arith.constant 0 : i32
    return %c0_i32, %1 : i32, i32
  }
  func.func @transform_5(%arg0: i32, %arg1: i32) -> (i32, i32, i32) {
    %c0_i32 = arith.constant 0 : i32
    %c0_i32_0 = arith.constant 0 : i32
    %c0_i32_1 = arith.constant 0 : i32
    return %arg0, %c0_i32, %c0_i32_0 : i32, i32, i32
  }
}

</mosaic_0001>

<bundles_post_ra>
// kernel: glmzip_forward.1
= control target key start
LH: loop header
LB: loop body
LE: loop exit
PB: predicated region body
PF: predicated region fallthrough
CT: control target
= control target key end

     0   :  { %10 = vsyncpa [#allocation4], 0  ;;  %s1190_s18 = smov 0   ;;  %s1192_s19 = smov 0   ;;  %s1904_s0 = inlined_call_operand.vmem [shape: f32[2], index: 0, kind: input, shape index: {}]   ;;  %s1905_s1 = inlined_call_operand.vmem [shape: f32[1,8192], index: 1, kind: input, shape index: {}]   ;;  %s1906_s2 = inlined_call_operand.vmem [shape: f32[8,1], index: 2, kind: input, shape index: {}]   ;;  %s1907_s3 = inlined_call_operand.vmem [shape: f32[8,1], index: 3, kind: input, shape index: {}]   ;;  %s1908_s4 = inlined_call_operand.vmem [shape: s8[8,8192], index: 4, kind: input, shape index: {}]   ;;  %s1909_s5 = inlined_call_operand.vmem [shape: f32[2,8,128], index: 5, kind: output, shape index: {}]  }
   0x1   :  { %s1194_s20 = smov 0   ;;  %s1196_s21 = smov 0  }
   0x2   :  { %s1198_s22 = smov 0  }
   0x3 LB: > { %s949_s23 = sadd.s32 4294967295, %s1154_s22   ;;  %s25_s24 = sadd.s32 1, %s1146_s20  ;;  %s1154_s22 = sphi %s1198_s22, %s16_s22   ;;  %s1150_s21 = sphi %s1196_s21, %s2028_s21   ;;  %s1146_s20 = sphi %s1194_s20, %s2027_s20   ;;  %s1142_s19 = sphi %s1192_s19, %s2026_s19   ;;  %s1138_s18 = sphi %s1190_s18, %s2025_s18  }
   0x4   : > { %p26_p0 = scmp.ge.s32.totalorder %s25_s24, 2  ;;  %s28_s25 = sadd.s32 1, %s1150_s21 }
   0x5   : > { %p955_p1 = scmp.ge.s32.totalorder %s1154_s22, 1  ;;  %p182_p2 = scmp.lt.s32.totalorder %s1154_s22, 5 }
   0x6   : > { %s2030_s24 = smov (%p26_p0, %s25_s24), 0  ;;  %s2032_s25 = smov (!%p26_p0, %s28_s25), %s1150_s21 }
   0x7   : > { %p1223_p3 = pnand %p955_p1, %p182_p2  ;;  %p30_p4 = scmp.ge.s32.totalorder %s2032_s25, 2 }
   0x8   : > { %p1227_p5 = scmp.eq.s32.totalorder %s949_s23, 0  ;;  %s195_s30 = sshll.u32 %s1904_s0, 4  ;;  %s196_s30 = int_to_ptr.vmem [resolvable:$true] %s195_s30 }
   0x9   : > { %p977_p6 = pneg %p1223_p3  ;;  %s2034_s25 = smov (%p30_p4, %s2032_s25), 0 }
   0xa   : > { %s1097_s6 = scalar_lea.vmem %s196_s30, 16  ;;  %p1105_p12 = scmp.lt.s32.totalorder %s196_s30, %s196_s30 }
   0xb   : > { %p978_p7 = pnand %p1227_p5, %p977_p6  ;;  %p1098_p8 = scmp.ne.s32.totalorder %s196_s30, %s1097_s6 }
   0xc   : > { %p1106_p13 = scmp.lt.s32.totalorder %s1097_s6, %s1097_s6 }
   0xd   : > { %p1099_p9 = pneg %p978_p7 }
   0xe   : > { %p1107_p0 = por %p1106_p13, %p1105_p12 }
   0xf   : > { %p1100_p10 = pnand %p1099_p9, %p1098_p8 }
  0x11   : > { %p1101_p11 = pneg %p1100_p10 }
  0x13   : > { %p1108_p1 = pnand %p1107_p0, %p1101_p11 }
  0x15   : > { %1111 = shalt.err (!%p1108_p1)
}
  0x16   : > { %s1156_s7 = smov [#allocation3]   ;;  %239 = sbr.rel (%p1223_p3) target bundleno = 537 (0x219), region = 40 }
  0x17   : > { %980 = dma.vmem_to_smem (!%p978_p7), %s196_s30, 16, %s1156_s7, [#allocation4]  }
  0x1d   : > { %1133 = dma.done.wait (%p1227_p5), [#allocation4], 16  }
  0x1e   : > { %1135 = vsyncadd (%p1227_p5), [#allocation4], 4294967280 }
  0x1f   : > { %245 = sfence }
  0x20   : > { %s960_s8 = sshll.u32 %s1142_s19, 1  ;;  %p294_p2 = scmp.lt.s32.totalorder %s1142_s19, 1 }
  0x21   : > { %s1249_s9 = sadd.s32 %s1138_s18, %s960_s8  ;;  %p966_p3 = scmp.ne.s32.totalorder %s1138_s18, 0 }
  0x22   : > { %s961_s10 = sshll.u32 %s1249_s9, 4  ;;  %s2036_s19 = smov (!%p294_p2, %s1142_s19), 1  ;;  %vm304_vm0 = vcmask (!%p966_p3), 7168   ;;  %v1157_v0 = vmov (!%p966_p3), 0.0  }
  0x23   : > { %p278_p4 = scmp.lt.s32.totalorder %s961_s10, 63  ;;  %s965_s11 = sshll.u32 %s2036_s19, 3  ;;  %305 = vst.msk [vmem:[#allocation2] sm:$0xff] (!%p966_p3), %vm304_vm0, %v1157_v0 }
  0x24   : > { %s1264_s28 = scalar_lea.vmem %s1909_s5, %s965_s11  ;;  %303 = sbr.rel (%p966_p3) target bundleno = 43 (0x2b), region = 48 }
  0x25   : > { %s2038_s10 = smov (!%p278_p4, %s961_s10), 63 }
  0x26   : > { %s280_s14 = scalar_lea.vmem %s1905_s1, %s2038_s10  ;;  %s964_s15 = sshll.u32 %s2038_s10, 1 }
  0x27   : > { %s1259_s23 = scalar_lea.vmem %s1908_s4, %s964_s15 }
  0x2b PF: > { %v1158_v1 = vmov 0   ;;  %v315_v2 = vld [vmem:[%s1907_s3] sm:$0xff]  ;;  %v1277_v6 = vld [vmem:[%s280_s14 + $0x8] sm:$0xff]  ;;  %v672_v9 = vld [vmem:[%s1259_s23 + $0x10] sm:$0xff]  ;;  %s967_s7 = sld [smem:[#allocation3 + $0x1]]  ;;  %v323_v11 = vlaneseq  ;;  %s1300_s8 = sld [smem:[#allocation3]] }
  0x2c   : > { %1027 = vset.pattern.permute.xlu0 %v1158_v1  ;;  %v314_v3 = vld [vmem:[%s1906_s2] sm:$0xff]  ;;  %v671_v8 = vld [vmem:[%s1259_s23 + $0x8] sm:$0xff]  ;;  %v312_v10 = vmul.f32 1.442695, %v1277_v6  ;;  %vm676_vm3 = vnez %v672_v9  ;;  %v673_v49 = vld [vmem:[%s1259_s23 + $0x18] sm:$0xff]  ;;  %s969_s11 = sshll.u32 %s1249_s9, 11 }
  0x2d   : > { %318 = vperm.xlu0 %1027, %v315_v2   ;;  %v1274_v4 = vld [vmem:[%s280_s14] sm:$0xff]  ;;  %vm675_vm2 = vnez %v671_v8  ;;  %v324_v14 = vshrl.u32 %v323_v11, 7  ;;  %v1290_v15 = vsel %vm676_vm3, 16843009, %v1158_v1  ;;  %vm677_vm4 = vnez %v673_v49  ;;  %p970_p5 = scmp.ne.s32.totalorder %s1138_s18, 1 }
  0x2e   : > { %v670_v5 = vld [vmem:[%s1259_s23] sm:$0xff]  ;;  %v310_v7 = vmul.f32 1.442695, %v1274_v4  ;;  %v1287_v13 = vsel %vm675_vm2, 16843009, %v1158_v1  ;;  %v1374_v61 = vand.u32 127, %v323_v11  ;;  %v1494_v16 = vstv %s969_s11 }
  0x2f   : > { %vm674_vm1 = vnez %v670_v5  ;;  %v1304_v26 = vsub.s32 0, %v324_v14  ;;  %v1308_v28 = vsub.s32 1, %v324_v14  ;;  %v1310_v29 = vsub.s32 2, %v324_v14  ;;  %1933 = vst [vmem:[#allocation12_spill] sm:$0xff] %v1494_v16 }
  0x30   : > { %1028 = vpow2.f32 %v310_v7  ;;  %v1284_v12 = vsel %vm674_vm1, 16843009, %v1158_v1  ;;  %v1312_v30 = vsub.s32 3, %v324_v14  ;;  %v1314_v31 = vsub.s32 4, %v324_v14 }
  0x31   : > { %421 = vperm.xlu0 %1027, %v314_v3   ;;  %1030 = vpow2.f32 %v312_v10  ;;  %v1306_v27 = vstv %s967_s7  ;;  %v1316_v32 = vsub.s32 5, %v324_v14  ;;  %v1318_v33 = vsub.s32 6, %v324_v14  ;;  %s555_s10 = ssub.f32 1.0, %s1300_s8 }
  0x32   : > { %v1320_v34 = vsub.s32 7, %v324_v14  ;;  %v1399_v14 = vstv %s1300_s8  ;;  %v1406_v54 = vadd.s32 128, %v1374_v61  ;;  %v1409_v53 = vadd.s32 256, %v1374_v61 }
  0x33   : > { %1927 = vst [vmem:[#allocation6_spill] sm:$0xff] %v1316_v32  ;;  %1928 = vst [vmem:[#allocation7_spill] sm:$0xff] %v1318_v33  ;;  %v1396_v11 = vstv %s555_s10  ;;  %v1412_v52 = vadd.s32 384, %v1374_v61  ;;  %v1435_v24 = vadd.s32 512, %v1374_v61  ;;  %v1447_v25 = vadd.s32 768, %v1374_v61 }
  0x34   : > { %1929 = vst [vmem:[#allocation8_spill] sm:$0xff] %v1320_v34  ;;  %v1456_v23 = vadd.s32 1024, %v1374_v61  ;;  %v1463_v22 = vadd.s32 1152, %v1374_v61  ;;  %v1466_v21 = vadd.s32 1280, %v1374_v61  ;;  %v1474_v43 = vadd.s32 1408, %v1374_v61 }
  0x35   : > { %v1485_v19 = vadd.s32 1664, %v1374_v61 }
  0x3a   : > { %v1324_v36 = vpop.eup %1028 }
  0x3b   : > { %v1351_v50 = vpop.eup %1030  ;;  %v326_v51 = vrot.slane %v1324_v36, %v1304_v26  ;;  %v330_v55 = vrot.slane %v1324_v36, %v1308_v28  ;;  %v334_v56 = vrot.slane %v1324_v36, %v1310_v29  ;;  %v338_v57 = vrot.slane %v1324_v36, %v1312_v30 }
  0x3c   : > { %v342_v58 = vrot.slane %v1324_v36, %v1314_v31  ;;  %v346_v59 = vrot.slane %v1324_v36, %v1316_v32  ;;  %v350_v60 = vrot.slane %v1324_v36, %v1318_v33  ;;  %v354_v62 = vrot.slane %v1324_v36, %v1320_v34 }
  0x3d   : > { %v358_v63 = vrot.slane %v1351_v50, %v1304_v26  ;;  %v362_v0 = vrot.slane %v1351_v50, %v1308_v28  ;;  %v366_v2 = vrot.slane %v1351_v50, %v1310_v29  ;;  %v370_v5 = vrot.slane %v1351_v50, %v1312_v30 }
  0x3e   : > { %v374_v7 = vrot.slane %v1351_v50, %v1314_v31  ;;  %v378_v8 = vrot.slane %v1351_v50, %v1316_v32  ;;  %v382_v9 = vrot.slane %v1351_v50, %v1318_v33  ;;  %v386_v10 = vrot.slane %v1351_v50, %v1320_v34 }
  0x3f   : > { %v1402_v36 = vsel %vm677_vm4, 16843009, %v1158_v1 }
  0x40   : > { %1930 = vst [vmem:[#allocation9_spill] sm:$0xff] %v1402_v36 }
  0xac   : > { %v1384_v3 = vpop.permute.xlu0 %318 }
  0xad   : > { %v1415_v50 = vmul.f32 %v326_v51, %v1384_v3  ;;  %v1418_v48 = vmul.f32 %v330_v55, %v1384_v3  ;;  %v1421_v1 = vmul.f32 %v334_v56, %v1384_v3  ;;  %v1425_v46 = vmul.f32 %v338_v57, %v1384_v3 }
  0xae   : > { %v1431_v51 = vmul.f32 %v342_v58, %v1384_v3  ;;  %v1438_v56 = vadd.s32 640, %v1374_v61  ;;  %v1441_v57 = vmul.f32 %v346_v59, %v1384_v3  ;;  %v1444_v45 = vmul.f32 %v350_v60, %v1384_v3 }
  0xaf   : > { %v1450_v58 = vadd.s32 896, %v1374_v61  ;;  %v556_v55 = vsub.f32 0.0, %v1415_v50  ;;  %v557_v49 = vsub.f32 0.0, %v1418_v48  ;;  %v558_v47 = vsub.f32 0.0, %v1421_v1 }
  0xb0   : > { %1931 = vst [vmem:[#allocation10_spill] sm:$0xff] %v1444_v45  ;;  %v1459_v59 = vmul.f32 %v354_v62, %v1384_v3  ;;  %v559_v60 = vsub.f32 0.0, %v1425_v46  ;;  %v1469_v44 = vmul.f32 %v358_v63, %v1384_v3  ;;  %v560_v20 = vsub.f32 0.0, %v1431_v51 }
  0xb1   : > { %v1477_v62 = vadd.s32 1536, %v1374_v61  ;;  %v1480_v42 = vmul.f32 %v362_v0, %v1384_v3  ;;  %v561_v41 = vsub.f32 0.0, %v1441_v57  ;;  %v562_v40 = vsub.f32 0.0, %v1444_v45 }
  0xb2   : > { %v1488_v63 = vmul.f32 %v366_v2, %v1384_v3  ;;  %v572_v39 = vmul.f32 1.442695, %v556_v55  ;;  %v574_v18 = vmul.f32 1.442695, %v557_v49  ;;  %v576_v38 = vmul.f32 1.442695, %v558_v47 }
  0xb3   : > { %1932 = vst [vmem:[#allocation11_spill] sm:$0xff] %v1480_v42  ;;  %v1491_v17 = vmul.f32 %v370_v5, %v1384_v3  ;;  %v563_v37 = vsub.f32 0.0, %v1459_v59  ;;  %v578_v0 = vmul.f32 1.442695, %v559_v60  ;;  %v1497_v35 = vmul.f32 %v374_v7, %v1384_v3 }
  0xb4   : > { %v564_v36 = vsub.f32 0.0, %v1469_v44  ;;  %1032 = vpow2.f32 %v572_v39  ;;  %v580_v45 = vmul.f32 1.442695, %v560_v20  ;;  %v1501_v2 = vmul.f32 %v378_v8, %v1384_v3 }
  0xb5   : > { %1934 = vst [vmem:[#allocation13_spill] sm:$0xff] %v1497_v35  ;;  %v565_v47 = vsub.f32 0.0, %v1480_v42  ;;  %1034 = vpow2.f32 %v574_v18  ;;  %v582_v5 = vmul.f32 1.442695, %v561_v41  ;;  %v1505_v49 = vmul.f32 %v382_v9, %v1384_v3 }
  0xb6   : > { %1935 = vst [vmem:[#allocation14_spill] sm:$0xff] %v1501_v2  ;;  %v566_v55 = vsub.f32 0.0, %v1488_v63  ;;  %1036 = vpow2.f32 %v576_v38  ;;  %v584_v60 = vmul.f32 1.442695, %v562_v40  ;;  %v1509_v7 = vmul.f32 %v386_v10, %v1384_v3 }
  0xb7   : > { %1936 = vst [vmem:[#allocation15_spill] sm:$0xff] %v1505_v49  ;;  %v567_v39 = vsub.f32 0.0, %v1491_v17  ;;  %1038 = vpow2.f32 %v578_v0  ;;  %v586_v20 = vmul.f32 1.442695, %v563_v37  ;;  %v568_v8 = vsub.f32 0.0, %v1497_v35 }
  0xb8   : > { %1937 = vst [vmem:[#allocation16_spill] sm:$0xff] %v1509_v7  ;;  %1040 = vpow2.f32 %v580_v45  ;;  %v588_v42 = vmul.f32 1.442695, %v564_v36  ;;  %v748_v18 = vadd.s32 1792, %v1374_v61  ;;  %v569_v41 = vsub.f32 0.0, %v1501_v2 }
  0xb9   : > { %1042 = vpow2.f32 %v582_v5  ;;  %v590_v9 = vmul.f32 1.442695, %v565_v47  ;;  %v1516_v38 = vadd.s32 1920, %v1374_v61  ;;  %v570_v40 = vsub.f32 0.0, %v1505_v49 }
  0xba   : > { %1044 = vpow2.f32 %v584_v60  ;;  %v592_v3 = vmul.f32 1.442695, %v566_v55  ;;  %v1521_v37 = vadd.s32 %v1494_v16, %v1374_v61  ;;  %v571_v45 = vsub.f32 0.0, %v1509_v7 }
  0xbb   : > { %1938 = vst [vmem:[#allocation17_spill] sm:$0xff] %v1516_v38  ;;  %1046 = vpow2.f32 %v586_v20  ;;  %v594_v10 = vmul.f32 1.442695, %v567_v39  ;;  %v1526_v36 = vadd.s32 %v1494_v16, %v1406_v54  ;;  %v596_v0 = vmul.f32 1.442695, %v568_v8 }
  0xbc   : > { %1048 = vpow2.f32 %v588_v42  ;;  %v1530_v47 = vadd.s32 %v1494_v16, %v1409_v53  ;;  %v1534_v5 = vadd.s32 %v1494_v16, %v1412_v52  ;;  %v598_v61 = vmul.f32 1.442695, %v569_v41 }
  0xbd   : > { %1050 = vpow2.f32 %v590_v9  ;;  %v1538_v55 = vadd.s32 %v1494_v16, %v1435_v24  ;;  %v1542_v54 = vadd.s32 %v1494_v16, %v1438_v56  ;;  %v600_v60 = vmul.f32 1.442695, %v570_v40 }
  0xbe   : > { %v1033_v42 = vpop.eup %1032  ;;  %1052 = vpow2.f32 %v592_v3  ;;  %v1546_v53 = vadd.s32 %v1494_v16, %v1447_v25  ;;  %v1550_v52 = vadd.s32 %v1494_v16, %v1450_v58  ;;  %v602_v20 = vmul.f32 1.442695, %v571_v45 }
  0xbf   : > { %v1035_v39 = vpop.eup %1034  ;;  %1054 = vpow2.f32 %v594_v10  ;;  %v605_v24 = vmul.f32 %v1033_v42, %v1396_v11  ;;  %v1555_v56 = vadd.s32 %v1494_v16, %v1456_v23  ;;  %v1560_v25 = vadd.s32 %v1494_v16, %v1463_v22  ;;  %v1572_v10 = vpop.permute.xlu0 %421 }
  0xc0   : > { %v1037_v8 = vpop.eup %1036  ;;  %1056 = vpow2.f32 %v596_v0  ;;  %v606_v41 = vmul.f32 %v1035_v39, %v1396_v11  ;;  %v1564_v58 = vadd.s32 %v1494_v16, %v1466_v21  ;;  %v1570_v23 = vadd.s32 %v1494_v16, %v1474_v43 }
  0xc1   : > { %1939 = vst [vmem:[#allocation18_spill] sm:$0xff] %v1560_v25  ;;  %v1039_v9 = vpop.eup %1038  ;;  %1058 = vpow2.f32 %v598_v61  ;;  %v607_v40 = vmul.f32 %v1037_v8, %v1396_v11  ;;  %v622_v3 = vadd.f32 %v1399_v14, %v605_v24  ;;  %v1578_v21 = vadd.s32 %v1494_v16, %v1477_v62 }
  0xc2   : > { %1940 = vst [vmem:[#allocation19_spill] sm:$0xff] %v1564_v58  ;;  %1941 = vst [vmem:[#allocation20_spill] sm:$0xff] %v1570_v23  ;;  %v1041_v45 = vpop.eup %1040  ;;  %1060 = vpow2.f32 %v600_v60  ;;  %v608_v22 = vmul.f32 %v1039_v9, %v1396_v11  ;;  %v623_v0 = vadd.f32 %v1399_v14, %v606_v41  ;;  %v1584_v43 = vadd.s32 %v1494_v16, %v1485_v19 }
  0xc3   : > { %1942 = vst [vmem:[#allocation21_spill] sm:$0xff] %v1578_v21  ;;  %v1043_v61 = vpop.eup %1042  ;;  %1062 = vpow2.f32 %v602_v20  ;;  %v609_v42 = vmul.f32 %v1041_v45, %v1396_v11  ;;  %v624_v39 = vadd.f32 %v1399_v14, %v607_v40  ;;  %v1589_v41 = vadd.s32 %v1494_v16, %v748_v18 }
  0xc4   : > { %1943 = vst [vmem:[#allocation22_spill] sm:$0xff] %v1584_v43  ;;  %v1045_v24 = vpop.eup %1044  ;;  %v610_v60 = vmul.f32 %v1043_v61, %v1396_v11  ;;  %v625_v8 = vadd.f32 %v1399_v14, %v608_v22  ;;  %1064 = vlog2.f32 %v622_v3  ;;  %v1945_v20 = vrot.slane %v1274_v4, %v1304_v26 }
  0xc5   : > { %1944 = vst [vmem:[#allocation23_spill] sm:$0xff] %v1589_v41  ;;  %v1047_v62 = vpop.eup %1046  ;;  %v611_v40 = vmul.f32 %v1045_v24, %v1396_v11  ;;  %v626_v19 = vadd.f32 %v1399_v14, %v609_v42  ;;  %1066 = vlog2.f32 %v623_v0  ;;  %v1946_v61 = vunpack.c.0.s8 %v1284_v12 }
  0xc6   : > { %v506_v9 = vadd.f32 %v1945_v20, %v1572_v10  ;;  %v1049_v45 = vpop.eup %1048  ;;  %v1949_v18 = vrot.slane %v1274_v4, %v1308_v28  ;;  %v612_v41 = vmul.f32 %v1047_v62, %v1396_v11  ;;  %v627_v20 = vadd.f32 %v1399_v14, %v610_v60 }
  0xc7   : > { %vm1599_vm5 = vcmp.ne.s32.totalorder %v1946_v61, 0  ;;  %1068 = vlog2.f32 %v624_v39  ;;  %v1051_v24 = vpop.eup %1050  ;;  %v1950_v0 = vunpack.c.1.s8 %v1284_v12  ;;  %v1953_v61 = vrot.slane %v1274_v4, %v1310_v29 }
  0xc8   : > { %v507_v3 = vadd.f32 %v1949_v18, %v1572_v10  ;;  %v613_v16 = vmul.f32 %v1049_v45, %v1396_v11  ;;  %v628_v18 = vadd.f32 %v1399_v14, %v611_v40  ;;  %1070 = vlog2.f32 %v625_v8  ;;  %v1053_v39 = vpop.eup %1052 }
  0xc9   : > { %vm1611_vm6 = vcmp.ne.s32.totalorder %v1950_v0, 0  ;;  %v508_v43 = vadd.f32 %v1953_v61, %v1572_v10  ;;  %vm767_vm7 = vcmp.lt.s32.totalorder %v1521_v37, 6000  ;;  %v1954_v60 = vunpack.c.2.s8 %v1284_v12  ;;  %v1055_v8 = vpop.eup %1054 }
  0xca   : > { %v1957_v0 = vrot.slane %v1274_v4, %v1312_v30  ;;  %v614_v61 = vmul.f32 %v1051_v24, %v1396_v11  ;;  %v629_v45 = vadd.f32 %v1399_v14, %v612_v41  ;;  %1072 = vlog2.f32 %v626_v19  ;;  %v1057_v19 = vpop.eup %1056 }
  0xcb   : > { %vm1624_vm8 = vcmp.ne.s32.totalorder %v1954_v60, 0  ;;  %vm768_vm9 = vcmp.lt.s32.totalorder %v1526_v36, 6000  ;;  %v1958_v40 = vunpack.c.3.s8 %v1284_v12  ;;  %v1961_v7 = vrot.slane %v1274_v4, %v1314_v31 }
  0xcc   : > { %v509_v38 = vadd.f32 %v1957_v0, %v1572_v10  ;;  %v615_v24 = vmul.f32 %v1053_v39, %v1396_v11  ;;  %v630_v41 = vadd.f32 %v1399_v14, %v613_v16  ;;  %1074 = vlog2.f32 %v627_v20  ;;  %v1059_v16 = vpop.eup %1058 }
  0xcd   : > { %vm1637_vm10 = vcmp.ne.s32.totalorder %v1958_v40, 0  ;;  %v1645_v21 = vadd.f32 %v1961_v7, %v1572_v10  ;;  %v1962_v12 = vrot.slane %v1274_v4, %v1316_v32  ;;  %v1963_v40 = vrot.slane %v1274_v4, %v1318_v33 }
  0xce   : > { %v1964_v7 = vrot.slane %v1274_v4, %v1320_v34  ;;  %1076 = vlog2.f32 %v628_v18  ;;  %vm769_vm11 = vcmp.lt.s32.totalorder %v1530_v47, 6000  ;;  %v1965_v20 = vunpack.c.0.s8 %v1287_v13  ;;  %v1061_v18 = vpop.eup %1060 }
  0xcf   : > { %v1653_v0 = vadd.f32 %v1962_v12, %v1572_v10  ;;  %v1659_v49 = vadd.f32 %v1963_v40, %v1572_v10  ;;  %v1968_v40 = vrot.slane %v1277_v6, %v1304_v26  ;;  %v616_v4 = vmul.f32 %v1055_v8, %v1396_v11  ;;  %v1063_v26 = vpop.eup %1062 }
  0xd0   : > { %v1665_v39 = vadd.f32 %v1964_v7, %v1572_v10  ;;  %vm1670_vm12 = vcmp.ne.s32.totalorder %v1965_v20, 0  ;;  %v631_v7 = vadd.f32 %v1399_v14, %v614_v61  ;;  %1078 = vlog2.f32 %v629_v45 }
  0xd1   : > { %v1678_v23 = vadd.f32 %v1968_v40, %v1572_v10  ;;  %v523_v34 = vsub.f32 %v1306_v27, %v1415_v50  ;;  %v524_v20 = vsub.f32 %v1306_v27, %v1418_v48  ;;  %v525_v2 = vsub.f32 %v1306_v27, %v1421_v1  ;;  %v1065_v1 = vpop.eup %1064 }
  0xd2   : > { %v617_v33 = vmul.f32 %v1057_v19, %v1396_v11  ;;  %vm770_vm13 = vcmp.lt.s32.totalorder %v1534_v5, 6000  ;;  %v1969_v8 = vunpack.c.1.s8 %v1287_v13  ;;  %v526_v50 = vsub.f32 %v1306_v27, %v1425_v46  ;;  %v1067_v35 = vpop.eup %1066 }
  0xd3   : > { %v527_v48 = vsub.f32 %v1306_v27, %v1431_v51  ;;  %v632_v45 = vadd.f32 %v1399_v14, %v615_v24  ;;  %1080 = vlog2.f32 %v630_v41  ;;  %v528_v19 = vsub.f32 %v1306_v27, %v1441_v57  ;;  %v1069_v25 = vpop.eup %1068 }
  0xd4   : > { %vm1692_vm14 = vcmp.ne.s32.totalorder %v1969_v8, 0  ;;  %v539_v40 = vadd.f32 %v523_v34, %v506_v9  ;;  %v540_v58 = vadd.f32 %v524_v20, %v507_v3  ;;  %v618_v8 = vmul.f32 %v1059_v16, %v1396_v11  ;;  %v1071_v16 = vpop.eup %1070 }
  0xd5   : > { %vm771_vm15 = vcmp.lt.s32.totalorder %v1538_v55, 6000  ;;  %v1972_v32 = vunpack.c.2.s8 %v1287_v13  ;;  %v541_v51 = vadd.f32 %v525_v2, %v508_v43  ;;  %v633_v24 = vadd.f32 %v1399_v14, %v616_v4  ;;  %v1073_v4 = vpop.eup %1072 }
  0xd6   : > { %v639_v41 = vmul.f32 0.6931472, %v1065_v1  ;;  %1082 = vlog2.f32 %v631_v7  ;;  %v542_v57 = vadd.f32 %v526_v50, %v509_v38  ;;  %v619_v34 = vmul.f32 %v1061_v18, %v1396_v11  ;;  %v1075_v18 = vpop.eup %1074 }
  0xd7   : > { %vm1707_vm0 = vcmp.ne.s32.totalorder %v1972_v32, 0  ;;  %v634_v9 = vadd.f32 %v1399_v14, %v617_v33  ;;  %v641_v3 = vmul.f32 0.6931472, %v1067_v35  ;;  %vm772_vm1 = vcmp.lt.s32.totalorder %v1542_v54, 6000 }
  0xd8   : > { %v1975_v32 = vunpack.c.3.s8 %v1287_v13  ;;  %v620_v2 = vmul.f32 %v1063_v26, %v1396_v11  ;;  %v643_v43 = vmul.f32 0.6931472, %v1069_v25  ;;  %1084 = vlog2.f32 %v632_v45  ;;  %v1077_v42 = vpop.eup %1076 }
  0xd9   : > { %v714_v38 = vsel %vm1599_vm5, %v539_v40, %v639_v41  ;;  %v635_v33 = vadd.f32 %v1399_v14, %v618_v8  ;;  %v645_v35 = vmul.f32 0.6931472, %v1071_v16  ;;  %v715_v7 = vsel %vm1611_vm6, %v540_v58, %v641_v3  ;;  %v1981_v8 = vld [vmem:[#allocation10_spill] sm:$0xff] }
  0xda   : > { %vm1717_vm2 = vcmp.ne.s32.totalorder %v1975_v32, 0  ;;  %vm773_vm3 = vcmp.lt.s32.totalorder %v1546_v53, 6000  ;;  %v815_v13 = vsel %vm767_vm7, %v714_v38, 0.0  ;;  %v1978_v11 = vunpack.c.0.s8 %v1290_v15  ;;  %v1079_v40 = vpop.eup %1078 }
  0xdb   : > { %v647_v22 = vmul.f32 0.6931472, %v1073_v4  ;;  %1086 = vlog2.f32 %v633_v24  ;;  %v716_v26 = vsel %vm1624_vm8, %v541_v51, %v643_v43  ;;  %v816_v58 = vsel %vm768_vm9, %v715_v7, 0.0 }
  0xdc   : > { %vm1732_vm4 = vcmp.ne.s32.totalorder %v1978_v11, 0  ;;  %v543_v50 = vadd.f32 %v527_v48, %v1645_v21  ;;  %v649_v37 = vmul.f32 0.6931472, %v1075_v18  ;;  %v717_v45 = vsel %vm1637_vm10, %v542_v57, %v645_v35  ;;  %v1994_v11 = vld [vmem:[#allocation9_spill] sm:$0xff] }
  0xdd   : > { %vm774_vm5 = vcmp.lt.s32.totalorder %v1550_v52, 6000  ;;  %v832_v1 = vadd.f32 %v816_v58, %v815_v13  ;;  %v529_v24 = vsub.f32 %v1306_v27, %v1981_v8  ;;  %v636_v62 = vadd.f32 %v1399_v14, %v619_v34  ;;  %v1081_v3 = vpop.eup %1080  ;;  %v1993_v13 = vld [vmem:[#allocation11_spill] sm:$0xff] }
  0xde   : > { %1088 = vlog2.f32 %v634_v9  ;;  %v1982_v36 = vunpack.c.1.s8 %v1290_v15  ;;  %v817_v21 = vsel %vm769_vm11, %v716_v26, 0.0  ;;  %v544_v60 = vadd.f32 %v528_v19, %v1653_v0 }
  0xdf   : > { %v651_v48 = vmul.f32 0.6931472, %v1077_v42  ;;  %v718_v41 = vsel %vm1670_vm12, %v543_v50, %v647_v22  ;;  %v833_v57 = vadd.f32 %v832_v1, %v817_v21  ;;  %v530_v34 = vsub.f32 %v1306_v27, %v1459_v59 }
  0xe0   : > { %vm1749_vm6 = vcmp.ne.s32.totalorder %v1982_v36, 0  ;;  %v637_v9 = vadd.f32 %v1399_v14, %v620_v2  ;;  %1090 = vlog2.f32 %v635_v33  ;;  %v1985_v16 = vunpack.c.2.s8 %v1290_v15  ;;  %v1083_v59 = vpop.eup %1082 }
  0xe1   : > { %v818_v47 = vsel %vm770_vm13, %v717_v45, 0.0  ;;  %v545_v0 = vadd.f32 %v529_v24, %v1659_v49  ;;  %v653_v12 = vmul.f32 0.6931472, %v1079_v40  ;;  %v719_v19 = vsel %vm1692_vm14, %v544_v60, %v649_v37  ;;  %v2006_v60 = vld [vmem:[#allocation18_spill] sm:$0xff] }
  0xe2   : > { %vm1763_vm7 = vcmp.ne.s32.totalorder %v1985_v16, 0  ;;  %v834_v43 = vadd.f32 %v833_v57, %v818_v47  ;;  %v1988_v14 = vrot.slane %v1277_v6, %v1308_v28  ;;  %v531_v38 = vsub.f32 %v1306_v27, %v1469_v44  ;;  %v1085_v7 = vpop.eup %1084  ;;  %v2009_v16 = vld [vmem:[#allocation13_spill] sm:$0xff] }
  0xe3   : > { %1092 = vlog2.f32 %v636_v62  ;;  %v1989_v5 = vunpack.c.3.s8 %v1290_v15  ;;  %v819_v49 = vsel %vm771_vm15, %v718_v41, 0.0  ;;  %v546_v61 = vadd.f32 %v530_v34, %v1665_v39 }
  0xe4   : > { %v515_v2 = vadd.f32 %v1988_v14, %v1572_v10  ;;  %v655_v33 = vmul.f32 0.6931472, %v1081_v3  ;;  %v720_v28 = vsel %vm1707_vm0, %v545_v0, %v651_v48  ;;  %v835_v35 = vadd.f32 %v834_v43, %v819_v49  ;;  %v2010_v0 = vld [vmem:[#allocation19_spill] sm:$0xff] }
  0xe5   : > { %vm1780_vm8 = vcmp.ne.s32.totalorder %v1989_v5, 0  ;;  %v1992_v44 = vrot.slane %v1277_v6, %v1310_v29  ;;  %v532_v18 = vsub.f32 %v1306_v27, %v1993_v13  ;;  %1094 = vlog2.f32 %v637_v9  ;;  %v1087_v42 = vpop.eup %1086  ;;  %v2011_v14 = vld [vmem:[#allocation7_spill] sm:$0xff]  ;;  %v2013_v5 = vld [vmem:[#allocation14_spill] sm:$0xff] }
  0xe6   : > { %v1995_v55 = vunpack.c.0.s8 %v1994_v11  ;;  %v820_v39 = vsel %vm772_vm1, %v719_v19, 0.0  ;;  %v547_v46 = vadd.f32 %v531_v38, %v1678_v23  ;;  %v657_v26 = vmul.f32 0.6931472, %v1083_v59 }
  0xe7   : > { %v516_v15 = vadd.f32 %v1992_v44, %v1572_v10  ;;  %v721_v29 = vsel %vm1717_vm2, %v546_v61, %v653_v12  ;;  %v836_v58 = vadd.f32 %v835_v35, %v820_v39  ;;  %v1998_v50 = vrot.slane %v1277_v6, %v1312_v30  ;;  %v2014_v61 = vld [vmem:[#allocation20_spill] sm:$0xff]  ;;  %v2018_v39 = vld [vmem:[#allocation21_spill] sm:$0xff] }
  0xe8   : > { %vm1797_vm9 = vcmp.ne.s32.totalorder %v1995_v55, 0  ;;  %v533_v45 = vsub.f32 %v1306_v27, %v1488_v63  ;;  %v1999_v1 = vunpack.c.1.s8 %v1994_v11  ;;  %vm775_vm11 = vcmp.lt.s32.totalorder %v1555_v56, 6000  ;;  %v1089_v24 = vpop.eup %1088  ;;  %v2015_v44 = vld [vmem:[#allocation8_spill] sm:$0xff] }
  0xe9   : > { %v517_v37 = vadd.f32 %v1998_v50, %v1572_v10  ;;  %v821_v23 = vsel %vm773_vm3, %v720_v28, 0.0  ;;  %v548_v20 = vadd.f32 %v532_v18, %v515_v2  ;;  %v659_v40 = vmul.f32 0.6931472, %v1085_v7  ;;  %v2017_v18 = vld [vmem:[#allocation15_spill] sm:$0xff] }
  0xea   : > { %vm1814_vm10 = vcmp.ne.s32.totalorder %v1999_v1, 0  ;;  %v722_v30 = vsel %vm1732_vm4, %v547_v46, %v655_v33  ;;  %v837_v8 = vadd.f32 %v836_v58, %v821_v23  ;;  %v2002_v63 = vrot.slane %v1277_v6, %v1314_v31  ;;  %v1091_v3 = vpop.eup %1090 }
  0xeb   : > { %v534_v36 = vsub.f32 %v1306_v27, %v1491_v17  ;;  %v2003_v21 = vunpack.c.2.s8 %v1994_v11  ;;  %vm776_vm13 = vcmp.lt.s32.totalorder %v2006_v60, 6000  ;;  %v822_v25 = vsel %vm774_vm5, %v721_v29, 0.0  ;;  %v2007_v17 = vld [vmem:[#allocation6_spill] sm:$0xff] }
  0xec   : > { %v518_v62 = vadd.f32 %v2002_v63, %v1572_v10  ;;  %v549_v48 = vadd.f32 %v533_v45, %v516_v15  ;;  %v661_v41 = vmul.f32 0.6931472, %v1087_v42  ;;  %v723_v31 = vsel %vm1749_vm6, %v548_v20, %v657_v26  ;;  %v2019_v42 = vld [vmem:[#allocation16_spill] sm:$0xff]  ;;  %v2022_v45 = vld [vmem:[#allocation22_spill] sm:$0xff]  ;;  %v2024_v63 = vld [vmem:[#allocation23_spill] sm:$0xff] }
  0xed   : > { %vm1831_vm12 = vcmp.ne.s32.totalorder %v2003_v21, 0  ;;  %v838_v57 = vadd.f32 %v837_v8, %v822_v25  ;;  %v2008_v34 = vrot.slane %v1277_v6, %v2007_v17  ;;  %v535_v47 = vsub.f32 %v1306_v27, %v2009_v16  ;;  %v1093_v59 = vpop.eup %1092 }
  0xee   : > { %vm777_vm14 = vcmp.lt.s32.totalorder %v2010_v0, 6000  ;;  %v823_v52 = vsel %vm775_vm11, %v722_v30, 0.0  ;;  %v550_v12 = vadd.f32 %v534_v36, %v517_v37  ;;  %v663_v19 = vmul.f32 0.6931472, %v1089_v24  ;;  %v2020_v37 = vld [vmem:[#allocation17_spill] sm:$0xff] }
  0xef   : > { %v519_v9 = vadd.f32 %v2008_v34, %v1572_v10  ;;  %v724_v51 = vsel %vm1763_vm7, %v549_v48, %v659_v40  ;;  %v839_v43 = vadd.f32 %v838_v57, %v823_v52  ;;  %v2012_v2 = vrot.slane %v1277_v6, %v2011_v14  ;;  %v1095_v7 = vpop.eup %1094 }
  0xf0   : > { %v536_v49 = vsub.f32 %v1306_v27, %v2013_v5  ;;  %vm778_vm15 = vcmp.lt.s32.totalorder %v2014_v61, 6000  ;;  %v824_v56 = vsel %vm776_vm13, %v723_v31, 0.0  ;;  %v551_v33 = vadd.f32 %v535_v47, %v518_v62  ;;  %v831_v31 = vld [vmem:[#allocation2] sm:$0xff] }
  0xf1   : > { %v520_v38 = vadd.f32 %v2012_v2, %v1572_v10  ;;  %v665_v28 = vmul.f32 0.6931472, %v1091_v3  ;;  %v725_v32 = vsel %vm1780_vm8, %v550_v12, %v661_v41  ;;  %v840_v35 = vadd.f32 %v839_v43, %v824_v56 }
  0xf2   : > { %v2016_v15 = vrot.slane %v1277_v6, %v2015_v44  ;;  %v537_v55 = vsub.f32 %v1306_v27, %v2017_v18  ;;  %vm779_vm0 = vcmp.lt.s32.totalorder %v2018_v39, 6000  ;;  %v825_v46 = vsel %vm777_vm14, %v724_v51, 0.0  ;;  %v2021_v6 = vld [vmem:[#allocation12_spill] sm:$0xff] }
  0xf3   : > { %v552_v26 = vadd.f32 %v536_v49, %v519_v9  ;;  %v667_v29 = vmul.f32 0.6931472, %v1093_v59  ;;  %v726_v4 = vsel %vm1797_vm9, %v551_v33, %v663_v19  ;;  %v841_v58 = vadd.f32 %v840_v35, %v825_v46 }
  0xf4   : > { %v521_v13 = vadd.f32 %v2016_v15, %v1572_v10  ;;  %v538_v50 = vsub.f32 %v1306_v27, %v2019_v42  ;;  %v766_v10 = vadd.s32 %v2021_v6, %v2020_v37  ;;  %vm780_vm1 = vcmp.lt.s32.totalorder %v2022_v45, 6000 }
  0xf5   : > { %v826_v1 = vsel %vm778_vm15, %v725_v32, 0.0  ;;  %v553_v23 = vadd.f32 %v537_v55, %v520_v38  ;;  %v669_v20 = vmul.f32 0.6931472, %v1095_v7  ;;  %v727_v40 = vsel %vm1814_vm10, %v552_v26, %v665_v28 }
  0xf6   : > { %v842_v30 = vadd.f32 %v841_v58, %v826_v1  ;;  %v2023_v22 = vunpack.c.3.s8 %v1994_v11  ;;  %v827_v8 = vsel %vm779_vm0, %v726_v4, 0.0  ;;  %v554_v24 = vadd.f32 %v538_v50, %v521_v13 }
  0xf7   : > { %v728_v27 = vsel %vm1831_vm12, %v553_v23, %v667_v29  ;;  %vm781_vm3 = vcmp.lt.s32.totalorder %v2024_v63, 6000  ;;  %v828_v36 = vsel %vm780_vm1, %v727_v40, 0.0  ;;  %vm782_vm4 = vcmp.lt.s32.totalorder %v766_v10, 6000 }
  0xf8   : > { %vm713_vm2 = vcmp.ne.s32.totalorder %v2023_v22, 0  ;;  %v843_v62 = vadd.f32 %v842_v30, %v827_v8  ;;  %v829_v25 = vsel %vm781_vm3, %v728_v27, 0.0  ;;  %vm850_vm5 = vcmask 7168  }
  0xf9   : > { %v729_v21 = vsel %vm713_vm2, %v554_v24, %v669_v20  ;;  %v1159_v3 = vmov (!%p970_p5), 0  }
  0xfa   : > { %v844_v60 = vadd.f32 %v843_v62, %v828_v36  ;;  %v830_v54 = vsel %vm782_vm4, %v729_v21, 0.0  ;;  %1096 = vset.pattern.permute.xlu0 (!%p970_p5), %v1159_v3 }
  0xfc   : > { %v845_v48 = vadd.f32 %v844_v60, %v829_v25 }
  0xfe   : > { %v846_v41 = vadd.f32 %v845_v48, %v830_v54 }
 0x100   : > { %847 = vadd.xlane.f32.xlu1 %v846_v41 }
 0x18a   : > { %855 = sbr.rel (%p970_p5) target bundleno = 537 (0x219), region = 52 }
 0x18d   : > { %v848_v11 = vpop.xlane.xlu1 %847 }
 0x18e   : > { %v849_v57 = vadd.f32 %v848_v11, %v831_v31 }
 0x190   : > { %851 = vst.msk [vmem:[#allocation2] sm:$0xff] %vm850_vm5, %v849_v57 }
 0x197   : > { %v856_v53 = vld [vmem:[#allocation2] sm:$0xff] }
 0x198   : > { %859 = vperm.xlu0 %1096, %v856_v53  }
 0x217   : > { %v860_v17 = vpop.permute.xlu0 %859 }
 0x218   : > { %862 = vst [vmem:[%s1264_s28] sm:$0xff] %v860_v17 }
 0x219 PF: > { %s16_s22 = sadd.s32 1, %s1154_s22   ;;  %s2025_s18 = smov %s1146_s20 }
 0x21a   : > { %p13_p6 = scmp.ge.s32.totalorder %s16_s22, 6   ;;  %s2026_s19 = smov %s1150_s21 }
 0x21b   : > { %s2027_s20 = smov %s2030_s24  ;;  %s2028_s21 = smov %s2034_s25 }
 0x21c   :  { %15 = sbr.rel (!%p13_p6) target bundleno = 3 (0x3), region = 86 }
 0x223   :  { %882 = vsyncpa [#allocation4], 1 }
 0x224   :  { %884 = vsyncpa [#allocation4 + $0x1], 1 }

</bundles_post_ra>
